<compile_context>
chip_gen: v7x
topology: tpu7x:2x2x1
jax: 0.10.0
libtpu: 0.0.40
codegen_flags: <defaults>
</compile_context>

<pallas_src>
import jax
import jax.numpy as jnp
from jax import lax
from jax.experimental import pallas as pl
from jax.experimental.pallas import tpu as pltpu


def _round_up(v: int, m: int) -> int:
    return (v + m - 1) // m * m


def _make_vmem_gather_kernel(tm: int):
    """Fast path: full token table resident in VMEM; gather = dynamic row reads."""

    def kernel(ids_ref, tok_tbl_ref, pos_ref, out_ref):
        # ids_ref:     (B, N_pad) int32 in SMEM (scalar prefetch)
        # tok_tbl_ref: (V, E) full token table, resident in VMEM
        # pos_ref:     (TM, E) contiguous position block for this step
        # out_ref:     (TM, E) output block
        b = pl.program_id(0)
        j = pl.program_id(1)
        base = j * tm

        def body(i, carry):
            tok_id = ids_ref[b, base + i]
            row = tok_tbl_ref[pl.ds(tok_id, 1), :] + pos_ref[pl.ds(i, 1), :]
            out_ref[pl.ds(i, 1), :] = row.astype(out_ref.dtype)
            return carry

        lax.fori_loop(0, tm, body, 0, unroll=(tm <= 64))

    return kernel


def _make_dma_gather_kernel(tm: int):
    """Fallback for large vocabularies: per-row DMA gather from HBM into VMEM."""

    def kernel(ids_ref, tok_hbm_ref, pos_ref, out_ref, row_buf, sems):
        # tok_hbm_ref: (V, E) token table left in HBM (memory_space=pl.ANY)
        # row_buf:     (TM, E) VMEM scratch receiving the gathered rows
        # sems:        (TM,) DMA semaphores, one per in-flight row
        b = pl.program_id(0)
        j = pl.program_id(1)
        base = j * tm

        def issue(i, carry):
            tok_id = ids_ref[b, base + i]
            pltpu.make_async_copy(
                tok_hbm_ref.at[pl.ds(tok_id, 1), :],
                row_buf.at[pl.ds(i, 1), :],
                sems.at[i],
            ).start()
            return carry

        lax.fori_loop(0, tm, issue, 0)

        def wait(i, carry):
            pltpu.make_async_copy(
                tok_hbm_ref.at[pl.ds(0, 1), :],
                row_buf.at[pl.ds(i, 1), :],
                sems.at[i],
            ).wait()
            return carry

        lax.fori_loop(0, tm, wait, 0)

        out_ref[...] = (row_buf[...] + pos_ref[...]).astype(out_ref.dtype)

    return kernel


# Conservative budget for keeping the token table resident in VMEM
# (v7x has 64 MiB per TensorCore; v5e/v6e have 128 MiB).
_FAST_PATH_BUDGET_BYTES = 40 * 1024 * 1024


def embed_forward(x, token_table, position_table, *, block_tokens: int = 256):
    """Pallas equivalent of Embed.forward.

    x:              (B, N) integer token ids
    token_table:    (vocab_size, embed_size)
    position_table: (max_context_len, embed_size)
    returns:        (B, N, embed_size)
    """
    B, N = x.shape
    V, E = token_table.shape
    L, _ = position_table.shape
    assert N <= L, "sequence length must not exceed max_context_len"

    out_dtype = jnp.promote_types(token_table.dtype, position_table.dtype)
    itemsize = jnp.dtype(out_dtype).itemsize

    # Token-axis block size: multiple of 8 (sublane-dense output), capped at
    # block_tokens; the sequence is padded up to a multiple of TM.
    tm = min(_round_up(block_tokens, 8), _round_up(N, 8))
    n_pad = _round_up(N, tm)
    num_j = n_pad // tm

    # TODO(synk): PyTorch nn.Embedding raises on out-of-range ids; we clamp so
    # the data-dependent gather never reads out of bounds.
    ids = jnp.clip(x, 0, V - 1).astype(jnp.int32)
    if n_pad != N:
        ids = jnp.pad(ids, ((0, 0), (0, n_pad - N)))
    # TODO(synk): for very long contexts (B*N in the 100Ks) the id array should
    # be chunked rather than fully scalar-prefetched into SMEM.

    # Positions are arange(N): a contiguous slab, identical across batch.
    pos_slab = position_table[:N].astype(out_dtype)
    if n_pad != N:
        pos_slab = jnp.pad(pos_slab, ((0, n_pad - N), (0, 0)))

    tok = token_table.astype(out_dtype)

    grid = (B, num_j)
    block_bytes = tm * E * itemsize
    table_bytes = V * E * itemsize

    pos_spec = pl.BlockSpec((tm, E), lambda b, j, ids_ref: (j, 0))
    out_spec = pl.BlockSpec((None, tm, E), lambda b, j, ids_ref: (b, j, 0))
    out_shape = jax.ShapeDtypeStruct((B, n_pad, E), out_dtype)

    use_fast_path = (table_bytes + 4 * block_bytes) <= _FAST_PATH_BUDGET_BYTES

    if use_fast_path:
        # Whole token table resident in VMEM (constant index_map -> DMA'd from
        # HBM exactly once); gather happens entirely in VMEM.
        tok_spec = pl.BlockSpec((V, E), lambda b, j, ids_ref: (0, 0))
        vmem_limit = min(
            max(table_bytes + 6 * block_bytes + (4 << 20), 32 << 20), 56 << 20
        )
        out = pl.pallas_call(
            _make_vmem_gather_kernel(tm),
            out_shape=out_shape,
            grid_spec=pltpu.PrefetchScalarGridSpec(
                num_scalar_prefetch=1,
                grid=grid,
                in_specs=[tok_spec, pos_spec],
                out_specs=out_spec,
            ),
            compiler_params=pltpu.CompilerParams(
                # Both grid axes are independent (no reduction / accumulator).
                dimension_semantics=("parallel", "parallel"),
                vmem_limit_bytes=int(vmem_limit),
            ),
        )(ids, tok, pos_slab)
    else:
        # Large-vocab fallback: token table stays in HBM; per-row DMA gather
        # into a (TM, E) VMEM scratch, then one fused add + dense store.
        tok_spec = pl.BlockSpec(memory_space=pl.ANY)
        vmem_limit = min(max(8 * block_bytes + (4 << 20), 32 << 20), 56 << 20)
        out = pl.pallas_call(
            _make_dma_gather_kernel(tm),
            out_shape=out_shape,
            grid_spec=pltpu.PrefetchScalarGridSpec(
                num_scalar_prefetch=1,
                grid=grid,
                in_specs=[tok_spec, pos_spec],
                out_specs=out_spec,
                scratch_shapes=[
                    pltpu.VMEM((tm, E), out_dtype),
                    pltpu.SemaphoreType.DMA((tm,)),
                ],
            ),
            compiler_params=pltpu.CompilerParams(
                dimension_semantics=("parallel", "parallel"),
                vmem_limit_bytes=int(vmem_limit),
            ),
        )(ids, tok, pos_slab)

    if n_pad != N:
        out = out[:, :N, :]
    return out


if __name__ == "__main__":
    # Small shapes consistent with the module's forward.
    B, N = 2, 8                 # batch, sequence length
    vocab_size = 32
    embed_size = 128            # lane-dense output (multiple of 128)
    max_context_len = 16

    key = jax.random.PRNGKey(0)
    k_tok, k_pos, k_x = jax.random.split(key, 3)

    # Deterministic parameter init (nn.Embedding default: N(0, 1)).
    token_table = jax.random.normal(k_tok, (vocab_size, embed_size), jnp.float32)
    position_table = jax.random.normal(
        k_pos, (max_context_len, embed_size), jnp.float32
    )

    x = jax.random.randint(k_x, (B, N), 0, vocab_size, dtype=jnp.int32)

    out = embed_forward(x, token_table, position_table)
    out = jax.block_until_ready(out)

    # Reference check in plain JAX (same semantics as the PyTorch forward).
    ref = token_table[x] + position_table[jnp.arange(N)][None, :, :]
    assert out.shape == (B, N, embed_size)
    assert jnp.allclose(out, ref, atol=1e-5, rtol=1e-5)

    print("KERNEL_OK")
</pallas_src>

<mosaic_0001>
module attributes {stable_mosaic.version = 11 : i64} {
  func.func @kernel(%arg0: i32, %arg1: i32, %arg2: memref<2x8xi32, #tpu.memory_space<smem>>, %arg3: memref<32x128xf32, #tpu.memory_space<vmem>>, %arg4: memref<8x128xf32, #tpu.memory_space<vmem>>, %arg5: memref<1x8x128xf32, #tpu.memory_space<vmem>>) attributes {dimension_semantics = [#tpu.dimension_semantics<parallel>, #tpu.dimension_semantics<parallel>], iteration_bounds = array<i64: 2, 1>, scalar_prefetch = 1 : i64, scratch_operands = 0 : i64, tpu.core_type = #tpu.core_type<tc>, window_params = [{pipeline_mode = #tpu.pipeline_mode<synchronous>, transform_indices = @transform_0, window_bounds = array<i64: 32, 128>}, {transform_indices = @transform_1, window_bounds = array<i64: 8, 128>}, {transform_indices = @transform_2, window_bounds = array<i64: 1, 8, 128>}]} {
    %c8_i32 = arith.constant 8 : i32
    %0 = arith.muli %arg1, %c8_i32 : i32
    %c0_i32 = arith.constant 0 : i32
    %1 = arith.addi %0, %c0_i32 : i32
    %2 = arith.index_cast %arg0 : i32 to index
    %3 = arith.index_cast %1 : i32 to index
    %4 = memref.load %arg2[%2, %3] : memref<2x8xi32, #tpu.memory_space<smem>>
    %5 = arith.index_cast %4 : i32 to index
    %c0 = arith.constant 0 : index
    %6 = vector.load %arg3[%5, %c0] : memref<32x128xf32, #tpu.memory_space<vmem>>, vector<1x128xf32>
    %7 = arith.index_cast %c0_i32 : i32 to index
    %c0_0 = arith.constant 0 : index
    %8 = vector.load %arg4[%7, %c0_0] : memref<8x128xf32, #tpu.memory_space<vmem>>, vector<1x128xf32>
    %9 = arith.addf %6, %8 : vector<1x128xf32>
    %c0_1 = arith.constant 0 : index
    %10 = arith.index_cast %c0_i32 : i32 to index
    %c0_2 = arith.constant 0 : index
    %11 = vector.load %arg5[%c0_1, %10, %c0_2] : memref<1x8x128xf32, #tpu.memory_space<vmem>>, vector<1x1x128xf32>
    %12 = vector.shape_cast %11 : vector<1x1x128xf32> to vector<1x128xf32>
    %13 = vector.shape_cast %9 : vector<1x128xf32> to vector<1x1x128xf32>
    tpu.vector_store %arg5[%c0_1, %10, %c0_2], %13 {strides = array<i32>} : memref<1x8x128xf32, #tpu.memory_space<vmem>>, vector<1x1x128xf32>,
    %c1_i32 = arith.constant 1 : i32
    %14 = arith.addi %0, %c1_i32 : i32
    %15 = arith.index_cast %arg0 : i32 to index
    %16 = arith.index_cast %14 : i32 to index
    %17 = memref.load %arg2[%15, %16] : memref<2x8xi32, #tpu.memory_space<smem>>
    %18 = arith.index_cast %17 : i32 to index
    %c0_3 = arith.constant 0 : index
    %19 = vector.load %arg3[%18, %c0_3] : memref<32x128xf32, #tpu.memory_space<vmem>>, vector<1x128xf32>
    %20 = arith.index_cast %c1_i32 : i32 to index
    %c0_4 = arith.constant 0 : index
    %21 = vector.load %arg4[%20, %c0_4] : memref<8x128xf32, #tpu.memory_space<vmem>>, vector<1x128xf32>
    %22 = arith.addf %19, %21 : vector<1x128xf32>
    %c0_5 = arith.constant 0 : index
    %23 = arith.index_cast %c1_i32 : i32 to index
    %c0_6 = arith.constant 0 : index
    %24 = vector.load %arg5[%c0_5, %23, %c0_6] : memref<1x8x128xf32, #tpu.memory_space<vmem>>, vector<1x1x128xf32>
    %25 = vector.shape_cast %24 : vector<1x1x128xf32> to vector<1x128xf32>
    %26 = vector.shape_cast %22 : vector<1x128xf32> to vector<1x1x128xf32>
    tpu.vector_store %arg5[%c0_5, %23, %c0_6], %26 {strides = array<i32>} : memref<1x8x128xf32, #tpu.memory_space<vmem>>, vector<1x1x128xf32>,
    %c2_i32 = arith.constant 2 : i32
    %27 = arith.addi %0, %c2_i32 : i32
    %28 = arith.index_cast %arg0 : i32 to index
    %29 = arith.index_cast %27 : i32 to index
    %30 = memref.load %arg2[%28, %29] : memref<2x8xi32, #tpu.memory_space<smem>>
    %31 = arith.index_cast %30 : i32 to index
    %c0_7 = arith.constant 0 : index
    %32 = vector.load %arg3[%31, %c0_7] : memref<32x128xf32, #tpu.memory_space<vmem>>, vector<1x128xf32>
    %33 = arith.index_cast %c2_i32 : i32 to index
    %c0_8 = arith.constant 0 : index
    %34 = vector.load %arg4[%33, %c0_8] : memref<8x128xf32, #tpu.memory_space<vmem>>, vector<1x128xf32>
    %35 = arith.addf %32, %34 : vector<1x128xf32>
    %c0_9 = arith.constant 0 : index
    %36 = arith.index_cast %c2_i32 : i32 to index
    %c0_10 = arith.constant 0 : index
    %37 = vector.load %arg5[%c0_9, %36, %c0_10] : memref<1x8x128xf32, #tpu.memory_space<vmem>>, vector<1x1x128xf32>
    %38 = vector.shape_cast %37 : vector<1x1x128xf32> to vector<1x128xf32>
    %39 = vector.shape_cast %35 : vector<1x128xf32> to vector<1x1x128xf32>
    tpu.vector_store %arg5[%c0_9, %36, %c0_10], %39 {strides = array<i32>} : memref<1x8x128xf32, #tpu.memory_space<vmem>>, vector<1x1x128xf32>,
    %c3_i32 = arith.constant 3 : i32
    %40 = arith.addi %0, %c3_i32 : i32
    %41 = arith.index_cast %arg0 : i32 to index
    %42 = arith.index_cast %40 : i32 to index
    %43 = memref.load %arg2[%41, %42] : memref<2x8xi32, #tpu.memory_space<smem>>
    %44 = arith.index_cast %43 : i32 to index
    %c0_11 = arith.constant 0 : index
    %45 = vector.load %arg3[%44, %c0_11] : memref<32x128xf32, #tpu.memory_space<vmem>>, vector<1x128xf32>
    %46 = arith.index_cast %c3_i32 : i32 to index
    %c0_12 = arith.constant 0 : index
    %47 = vector.load %arg4[%46, %c0_12] : memref<8x128xf32, #tpu.memory_space<vmem>>, vector<1x128xf32>
    %48 = arith.addf %45, %47 : vector<1x128xf32>
    %c0_13 = arith.constant 0 : index
    %49 = arith.index_cast %c3_i32 : i32 to index
    %c0_14 = arith.constant 0 : index
    %50 = vector.load %arg5[%c0_13, %49, %c0_14] : memref<1x8x128xf32, #tpu.memory_space<vmem>>, vector<1x1x128xf32>
    %51 = vector.shape_cast %50 : vector<1x1x128xf32> to vector<1x128xf32>
    %52 = vector.shape_cast %48 : vector<1x128xf32> to vector<1x1x128xf32>
    tpu.vector_store %arg5[%c0_13, %49, %c0_14], %52 {strides = array<i32>} : memref<1x8x128xf32, #tpu.memory_space<vmem>>, vector<1x1x128xf32>,
    %c4_i32 = arith.constant 4 : i32
    %53 = arith.addi %0, %c4_i32 : i32
    %54 = arith.index_cast %arg0 : i32 to index
    %55 = arith.index_cast %53 : i32 to index
    %56 = memref.load %arg2[%54, %55] : memref<2x8xi32, #tpu.memory_space<smem>>
    %57 = arith.index_cast %56 : i32 to index
    %c0_15 = arith.constant 0 : index
    %58 = vector.load %arg3[%57, %c0_15] : memref<32x128xf32, #tpu.memory_space<vmem>>, vector<1x128xf32>
    %59 = arith.index_cast %c4_i32 : i32 to index
    %c0_16 = arith.constant 0 : index
    %60 = vector.load %arg4[%59, %c0_16] : memref<8x128xf32, #tpu.memory_space<vmem>>, vector<1x128xf32>
    %61 = arith.addf %58, %60 : vector<1x128xf32>
    %c0_17 = arith.constant 0 : index
    %62 = arith.index_cast %c4_i32 : i32 to index
    %c0_18 = arith.constant 0 : index
    %63 = vector.load %arg5[%c0_17, %62, %c0_18] : memref<1x8x128xf32, #tpu.memory_space<vmem>>, vector<1x1x128xf32>
    %64 = vector.shape_cast %63 : vector<1x1x128xf32> to vector<1x128xf32>
    %65 = vector.shape_cast %61 : vector<1x128xf32> to vector<1x1x128xf32>
    tpu.vector_store %arg5[%c0_17, %62, %c0_18], %65 {strides = array<i32>} : memref<1x8x128xf32, #tpu.memory_space<vmem>>, vector<1x1x128xf32>,
    %c5_i32 = arith.constant 5 : i32
    %66 = arith.addi %0, %c5_i32 : i32
    %67 = arith.index_cast %arg0 : i32 to index
    %68 = arith.index_cast %66 : i32 to index
    %69 = memref.load %arg2[%67, %68] : memref<2x8xi32, #tpu.memory_space<smem>>
    %70 = arith.index_cast %69 : i32 to index
    %c0_19 = arith.constant 0 : index
    %71 = vector.load %arg3[%70, %c0_19] : memref<32x128xf32, #tpu.memory_space<vmem>>, vector<1x128xf32>
    %72 = arith.index_cast %c5_i32 : i32 to index
    %c0_20 = arith.constant 0 : index
    %73 = vector.load %arg4[%72, %c0_20] : memref<8x128xf32, #tpu.memory_space<vmem>>, vector<1x128xf32>
    %74 = arith.addf %71, %73 : vector<1x128xf32>
    %c0_21 = arith.constant 0 : index
    %75 = arith.index_cast %c5_i32 : i32 to index
    %c0_22 = arith.constant 0 : index
    %76 = vector.load %arg5[%c0_21, %75, %c0_22] : memref<1x8x128xf32, #tpu.memory_space<vmem>>, vector<1x1x128xf32>
    %77 = vector.shape_cast %76 : vector<1x1x128xf32> to vector<1x128xf32>
    %78 = vector.shape_cast %74 : vector<1x128xf32> to vector<1x1x128xf32>
    tpu.vector_store %arg5[%c0_21, %75, %c0_22], %78 {strides = array<i32>} : memref<1x8x128xf32, #tpu.memory_space<vmem>>, vector<1x1x128xf32>,
    %c6_i32 = arith.constant 6 : i32
    %79 = arith.addi %0, %c6_i32 : i32
    %80 = arith.index_cast %arg0 : i32 to index
    %81 = arith.index_cast %79 : i32 to index
    %82 = memref.load %arg2[%80, %81] : memref<2x8xi32, #tpu.memory_space<smem>>
    %83 = arith.index_cast %82 : i32 to index
    %c0_23 = arith.constant 0 : index
    %84 = vector.load %arg3[%83, %c0_23] : memref<32x128xf32, #tpu.memory_space<vmem>>, vector<1x128xf32>
    %85 = arith.index_cast %c6_i32 : i32 to index
    %c0_24 = arith.constant 0 : index
    %86 = vector.load %arg4[%85, %c0_24] : memref<8x128xf32, #tpu.memory_space<vmem>>, vector<1x128xf32>
    %87 = arith.addf %84, %86 : vector<1x128xf32>
    %c0_25 = arith.constant 0 : index
    %88 = arith.index_cast %c6_i32 : i32 to index
    %c0_26 = arith.constant 0 : index
    %89 = vector.load %arg5[%c0_25, %88, %c0_26] : memref<1x8x128xf32, #tpu.memory_space<vmem>>, vector<1x1x128xf32>
    %90 = vector.shape_cast %89 : vector<1x1x128xf32> to vector<1x128xf32>
    %91 = vector.shape_cast %87 : vector<1x128xf32> to vector<1x1x128xf32>
    tpu.vector_store %arg5[%c0_25, %88, %c0_26], %91 {strides = array<i32>} : memref<1x8x128xf32, #tpu.memory_space<vmem>>, vector<1x1x128xf32>,
    %c7_i32 = arith.constant 7 : i32
    %92 = arith.addi %0, %c7_i32 : i32
    %93 = arith.index_cast %arg0 : i32 to index
    %94 = arith.index_cast %92 : i32 to index
    %95 = memref.load %arg2[%93, %94] : memref<2x8xi32, #tpu.memory_space<smem>>
    %96 = arith.index_cast %95 : i32 to index
    %c0_27 = arith.constant 0 : index
    %97 = vector.load %arg3[%96, %c0_27] : memref<32x128xf32, #tpu.memory_space<vmem>>, vector<1x128xf32>
    %98 = arith.index_cast %c7_i32 : i32 to index
    %c0_28 = arith.constant 0 : index
    %99 = vector.load %arg4[%98, %c0_28] : memref<8x128xf32, #tpu.memory_space<vmem>>, vector<1x128xf32>
    %100 = arith.addf %97, %99 : vector<1x128xf32>
    %c0_29 = arith.constant 0 : index
    %101 = arith.index_cast %c7_i32 : i32 to index
    %c0_30 = arith.constant 0 : index
    %102 = vector.load %arg5[%c0_29, %101, %c0_30] : memref<1x8x128xf32, #tpu.memory_space<vmem>>, vector<1x1x128xf32>
    %103 = vector.shape_cast %102 : vector<1x1x128xf32> to vector<1x128xf32>
    %104 = vector.shape_cast %100 : vector<1x128xf32> to vector<1x1x128xf32>
    tpu.vector_store %arg5[%c0_29, %101, %c0_30], %104 {strides = array<i32>} : memref<1x8x128xf32, #tpu.memory_space<vmem>>, vector<1x1x128xf32>,
    %c8_i32_31 = arith.constant 8 : i32
    return
  }
  func.func @transform_0(%arg0: i32, %arg1: i32, %arg2: memref<2x8xi32, #tpu.memory_space<smem>>) -> (i32, i32) {
    %c0_i32 = arith.constant 0 : i32
    %c0_i32_0 = arith.constant 0 : i32
    %c0_i32_1 = arith.constant 0 : i32
    return %c0_i32, %c0_i32_0 : i32, i32
  }
  func.func @transform_1(%arg0: i32, %arg1: i32, %arg2: memref<2x8xi32, #tpu.memory_space<smem>>) -> (i32, i32) {
    %c0_i32 = arith.constant 0 : i32
    %c0_i32_0 = arith.constant 0 : i32
    return %arg1, %c0_i32 : i32, i32
  }
  func.func @transform_2(%arg0: i32, %arg1: i32, %arg2: memref<2x8xi32, #tpu.memory_space<smem>>) -> (i32, i32, i32) {
    %c0_i32 = arith.constant 0 : i32
    %c0_i32_0 = arith.constant 0 : i32
    return %arg0, %arg1, %c0_i32 : i32, i32, i32
  }
}

</mosaic_0001>

<bundles_post_ra>
// kernel: tpu_custom_call.1
= control target key start
LH: loop header
LB: loop body
LE: loop exit
PB: predicated region body
PF: predicated region fallthrough
CT: control target
= control target key end

     0   :  { %s893_s0 = inlined_call_operand.hbm [shape: s32[2,8], index: 0, kind: input, shape index: {}]   ;;  %s894_s1 = inlined_call_operand.hbm [shape: f32[32,128], index: 1, kind: input, shape index: {}]   ;;  %s895_s2 = inlined_call_operand.hbm [shape: f32[8,128], index: 2, kind: input, shape index: {}]   ;;  %s896_s3 = inlined_call_operand.hbm [shape: f32[2,8,128], index: 3, kind: output, shape index: {}]  }
   0x1   :  { %s491_s14 = scalar_lea.hbm %s893_s0, 32 }
   0x2   :  { %p492_p0 = scmp.ne.s32.totalorder %s893_s0, %s491_s14  ;;  %p495_p1 = scmp.lt.u32.totalorder %s491_s14, %s893_s0 }
   0x4   :  { %p497_p2 = pnand %p495_p1, %p492_p0 }
   0x6   :  { %500 = shalt.err (!%p497_p2)  }
   0x7   :  { %s647_s19 = smov [#allocation3]  }
   0x8   :  { %9 = dma.hbm_to_smem %s893_s0, 32, %s647_s19, [#allocation2] }
   0x9   :  { %609 = dma.done.wait [#allocation2], 32 }
   0xa   :  { %610 = vsyncadd [#allocation2], 4294967264 }
   0xb   :  { %11 = sfence }
   0xc   :  { %12 = vsyncpa [#allocation5], 0 }
   0xd   :  { %13 = vsyncpa [#allocation8], 0 }
   0xe   :  { %14 = vsyncpa [#allocation6], 0 }
   0xf   :  { %16 = vsyncpa [#allocation6 + $0x1], 0  ;;  %s685_s22 = smov 0   ;;  %s687_s23 = smov 0  }
  0x10   :  { %s689_s24 = smov 0   ;;  %s691_s25 = smov 0  }
  0x11   :  { %s693_s26 = smov 0   ;;  %s695_s27 = smov 0  }
  0x12 LB: > { %s391_s0 = sadd.s32 4294967295, %s645_s27   ;;  %s392_s28 = sadd.s32 4294967294, %s645_s27   ;;  %s645_s27 = sphi %s695_s27, %s22_s27   ;;  %s641_s26 = sphi %s693_s26, %s914_s26   ;;  %s637_s25 = sphi %s691_s25, %s913_s25   ;;  %s633_s24 = sphi %s689_s24, %s912_s24   ;;  %s629_s23 = sphi %s687_s23, %s911_s23   ;;  %s625_s22 = sphi %s685_s22, %s910_s22  }
  0x13   : > { %s34_s29 = sadd.s32 1, %s641_s26  ;;  %s90_s30 = sadd.s32 1, %s633_s24 }
  0x14   : > { %p36_p3 = scmp.ge.s32.totalorder %s34_s29, 2  ;;  %p100_p4 = scmp.ne.s32.totalorder %s633_s24, %s629_s23 }
  0x15   : > { %p101_p5 = scmp.eq.s32.totalorder %s391_s0, 1  ;;  %p106_p6 = scmp.ne.s32.totalorder %s629_s23, %s625_s22 }
  0x16   : > { %s916_s29 = smov (%p36_p3, %s34_s29), 0  ;;  %p107_p8 = scmp.eq.s32.totalorder %s392_s28, 1 }
  0x17   : > { %p725_p7 = por %p101_p5, %p100_p4  ;;  %s85_s5 = ssub.s32 %s641_s26, %s916_s29 }
  0x18   : > { %p393_p9 = scmp.ge.s32.totalorder %s645_s27, 1  ;;  %p88_p10 = scmp.eq.s32.totalorder %s85_s5, 0 }
  0x19   : > { %s901_s4 = scalar_select %p725_p7, 1, 0 }
  0x1a   : > { %p732_p11 = por %p107_p8, %p106_p6  ;;  %p114_p12 = scmp.lt.s32.totalorder %s645_s27, 3 }
  0x1b   : > { %s738_s7 = scalar_select %p88_p10, %s633_s24, %s90_s30  }
  0x1c   : > { %s902_s6 = scalar_select %p732_p11, 1, 0 }
  0x1d   : > { %p740_p13 = pnand %p393_p9, %p114_p12  ;;  %p744_p0 = scmp.eq.s32.totalorder %s391_s0, 0 }
  0x1e   : > { %s648_s10 = smov [#allocation4]   ;;  %s649_s13 = smov [#allocation7]  }
  0x1f   : > { %s903_s8 = scalar_select %p740_p13, 1, 0 }
  0x20   : > { %s904_s9 = scalar_select %p744_p0, 1, 0 }
  0x21   : > { %p422_p1 = pneg %p740_p13  ;;  %s126_s11 = sshll.u32 %s648_s10, 4  ;;  %s127_s11 = int_to_ptr.vmem [resolvable:$true] %s126_s11 }
  0x22   : > { %s142_s14 = sshll.u32 %s649_s13, 4  ;;  %s501_s17 = scalar_lea.hbm %s894_s1, 512  ;;  %s756_s14 = int_to_ptr.vmem [resolvable:$true] %s142_s14 }
  0x23   : > { %p752_p2 = pnand %p744_p0, %p422_p1  ;;  %p502_p3 = scmp.ne.s32.totalorder %s894_s1, %s501_s17 }
  0x24   : > { %p508_p8 = scmp.lt.u32.totalorder %s501_s17, %s894_s1 }
  0x25   : > { %p503_p4 = pneg %p752_p2 }
  0x27   : > { %p504_p5 = pnand %p503_p4, %p502_p3 }
  0x29   : > { %p505_p6 = pneg %p504_p5 }
  0x2b   : > { %p510_p9 = pnand %p508_p8, %p505_p6 }
  0x2d   : > { %513 = shalt.err (!%p510_p9)
}
  0x2e   : > { %s514_s0 = scalar_lea.vmem %s127_s11, 512  ;;  %p522_p11 = scmp.lt.s32.totalorder %s127_s11, %s127_s11 }
  0x2f   : > { %p515_p10 = scmp.ne.s32.totalorder %s127_s11, %s514_s0  ;;  %p523_p7 = scmp.lt.s32.totalorder %s514_s0, %s514_s0 }
  0x31   : > { %p517_p12 = pnand %p515_p10, %p503_p4  ;;  %p524_p0 = por %p523_p7, %p522_p11 }
  0x33   : > { %p518_p1 = pneg %p517_p12 }
  0x35   : > { %p525_p13 = pnand %p524_p0, %p518_p1 }
  0x37   : > { %528 = shalt.err (!%p525_p13)
}
  0x38   : > { %s650_s28 = smov 128   ;;  %s651_s30 = smov 8  }
  0x39   : > { %425 = dma.hbm_to_vmem [thread:$0]  (!%p752_p2), %s894_s1, 512, %s127_s11, [#allocation5], %s650_s28, %s650_s28, %s651_s30  }
  0x3a   : > { %s529_s16 = scalar_lea.hbm %s895_s2, 128 }
  0x3b   : > { %p530_p3 = scmp.ne.s32.totalorder %s895_s2, %s529_s16  ;;  %p536_p13 = scmp.lt.u32.totalorder %s529_s16, %s895_s2 }
  0x3d   : > { %p532_p7 = pnand %p530_p3, %p503_p4 }
  0x3f   : > { %p533_p11 = pneg %p532_p7 }
  0x41   : > { %p538_p0 = pnand %p536_p13, %p533_p11 }
  0x43   : > { %541 = shalt.err (!%p538_p0)
}
  0x44   : > { %s542_s11 = scalar_lea.vmem %s756_s14, 128  ;;  %p550_p9 = scmp.lt.s32.totalorder %s756_s14, %s756_s14 }
  0x45   : > { %p543_p5 = scmp.ne.s32.totalorder %s756_s14, %s542_s11  ;;  %p551_p10 = scmp.lt.s32.totalorder %s542_s11, %s542_s11 }
  0x47   : > { %p545_p6 = pnand %p543_p5, %p503_p4  ;;  %p552_p12 = por %p551_p10, %p550_p9 }
  0x49   : > { %p546_p8 = pneg %p545_p6 }
  0x4b   : > { %p553_p1 = pnand %p552_p12, %p546_p8 }
  0x4d   : > { %556 = shalt.err (!%p553_p1)
}
  0x4e   : > { %428 = dma.hbm_to_vmem [thread:$0]  (!%p752_p2), %s895_s2, 128, %s756_s14, [#allocation8]  }
  0x4f   : > { %p906_p3 = scmp.ne.s32.totalorder %s903_s8, 0 }
  0x50   : > { %p907_p7 = scmp.ne.s32.totalorder (!%p906_p3), %s904_s9, 0 }
  0x51   : > { %155 = sbr.rel (%p906_p3) target bundleno = 129 (0x81), region = 28 }
  0x58   : > { %612 = dma.done.wait (%p907_p7), [#allocation5], 512  }
  0x59   : > { %614 = vsyncadd (%p907_p7), [#allocation5], 4294966784 }
  0x5a   : > { %616 = dma.done.wait (%p907_p7), [#allocation8], 128  }
  0x5b   : > { %618 = vsyncadd (%p907_p7), [#allocation8], 4294967168  ;;  %s173_s12 = sand.u32 1, %s629_s23   ;;  %s817_s14 = sshll.u32 %s637_s25, 7  ;;  %v187_v0 = vld [vmem:[#allocation7] sm:$0x1] }
  0x5c   : > { %s184_s8 = sld [smem:[#allocation3 + %s817_s14]]  ;;  %s399_s28 = sshll.u32 %s173_s12, 3  ;;  %v201_v3 = vld [vmem:[#allocation7 + $0x1] sm:$0x1]  ;;  %v215_v4 = vld [vmem:[#allocation7 + $0x2] sm:$0x1] }
  0x5d   : > { %s197_s30 = sadd.s32 1, %s817_s14  ;;  %s211_s5 = sadd.s32 2, %s817_s14  ;;  %v229_v5 = vld [vmem:[#allocation7 + $0x3] sm:$0x1]  ;;  %v243_v6 = vld [vmem:[#allocation7 + $0x4] sm:$0x1] }
  0x5e   : > { %s198_s9 = sld [smem:[#allocation3 + %s197_s30]]  ;;  %s225_s13 = sadd.s32 3, %s817_s14  ;;  %v257_v15 = vld [vmem:[#allocation7 + $0x5] sm:$0x1]  ;;  %v271_v17 = vld [vmem:[#allocation7 + $0x6] sm:$0x1] }
  0x5f   : > { %s212_s10 = sld [smem:[#allocation3 + %s211_s5]]  ;;  %s239_s15 = sadd.s32 4, %s817_s14  ;;  %v285_v20 = vld [vmem:[#allocation7 + $0x7] sm:$0x1] }
  0x60   : > { %s226_s16 = sld [smem:[#allocation3 + %s225_s13]]  ;;  %s253_s25 = sadd.s32 5, %s817_s14 }
  0x61   : > { %s240_s17 = sld [smem:[#allocation3 + %s239_s15]]  ;;  %s267_s20 = sadd.s32 6, %s817_s14 }
  0x62   : > { %s185_s18 = scalar_lea.vmem [#allocation4], %s184_s8  ;;  %s254_s19 = sld [smem:[#allocation3 + %s253_s25]] }
  0x63   : > { %v186_v1 = vld [vmem:[%s185_s18] sm:$0x1]  ;;  %s828_s11 = scalar_lea.vmem [#allocation9], %s399_s28  ;;  %s268_s8 = sld [smem:[#allocation3 + %s267_s20]] }
  0x64   : > { %v188_v2 = vadd.f32 %v187_v0, %v186_v1  ;;  %s199_s21 = scalar_lea.vmem [#allocation4], %s198_s9  ;;  %s281_s30 = sadd.s32 7, %s817_s14 }
  0x65   : > { %v200_v7 = vld [vmem:[%s199_s21] sm:$0x1]  ;;  %s213_s0 = scalar_lea.vmem [#allocation4], %s212_s10  ;;  %s282_s28 = sld [smem:[#allocation3 + %s281_s30]] }
  0x66   : > { %189 = vst [vmem:[%s828_s11] sm:$0x1] %v188_v2  ;;  %v214_v8 = vld [vmem:[%s213_s0] sm:$0x1]  ;;  %v202_v9 = vadd.f32 %v201_v3, %v200_v7  ;;  %s227_s5 = scalar_lea.vmem [#allocation4], %s226_s16  ;;  %s303_s15 = sshll.u32 %s828_s11, 4  ;;  %s845_s15 = int_to_ptr.vmem [resolvable:$true] %s303_s15 }
  0x67   : > { %v216_v10 = vadd.f32 %v215_v4, %v214_v8  ;;  %v228_v11 = vld [vmem:[%s227_s5] sm:$0x1]  ;;  %s241_s13 = scalar_lea.vmem [#allocation4], %s240_s17  ;;  %s843_s18 = scalar_lea.hbm %s896_s3, %s817_s14 }
  0x68   : > { %v242_v12 = vld [vmem:[%s241_s13] sm:$0x1]  ;;  %203 = vst [vmem:[%s828_s11 + $0x1] sm:$0x1] %v202_v9  ;;  %v230_v13 = vadd.f32 %v229_v5, %v228_v11  ;;  %s255_s9 = scalar_lea.vmem [#allocation4], %s254_s19  ;;  %s289_s19 = scalar_lea.sflag [#allocation6], %s173_s12 }
  0x69   : > { %217 = vst [vmem:[%s828_s11 + $0x2] sm:$0x1] %v216_v10  ;;  %v244_v14 = vadd.f32 %v243_v6, %v242_v12  ;;  %v256_v16 = vld [vmem:[%s255_s9] sm:$0x1]  ;;  %s269_s10 = scalar_lea.vmem [#allocation4], %s268_s8  ;;  %s557_s20 = scalar_lea.vmem %s845_s15, 128 }
  0x6a   : > { %231 = vst [vmem:[%s828_s11 + $0x3] sm:$0x1] %v230_v13  ;;  %v258_v18 = vadd.f32 %v257_v15, %v256_v16  ;;  %v270_v19 = vld [vmem:[%s269_s10] sm:$0x1]  ;;  %p558_p2 = scmp.ne.s32.totalorder %s845_s15, %s557_s20  ;;  %p908_p4 = scmp.ne.s32.totalorder %s901_s4, 0 }
  0x6b   : > { %245 = vst [vmem:[%s828_s11 + $0x4] sm:$0x1] %v244_v14  ;;  %v272_v21 = vadd.f32 %v271_v17, %v270_v19  ;;  %s283_s16 = scalar_lea.vmem [#allocation4], %s282_s28  ;;  %s652_s21 = smov [#allocation9]  }
  0x6c   : > { %259 = vst [vmem:[%s828_s11 + $0x5] sm:$0x1] %v258_v18  ;;  %v284_v22 = vld [vmem:[%s283_s16] sm:$0x1]  ;;  %p559_p11 = pnand %p558_p2, %p908_p4  ;;  %s561_s0 = sshll.u32 %s652_s21, 4  ;;  %s562_s0 = int_to_ptr.vmem [resolvable:$false] %s561_s0 }
  0x6d   : > { %273 = vst [vmem:[%s828_s11 + $0x6] sm:$0x1] %v272_v21  ;;  %v286_v23 = vadd.f32 %v285_v20, %v284_v22  ;;  %s563_s8 = scalar_lea.vmem %s562_s0, 256  ;;  %p564_p0 = scmp.lt.s32.totalorder %s845_s15, %s562_s0 }
  0x6e   : > { %p560_p13 = pneg %p559_p11  ;;  %p565_p5 = scmp.lt.s32.totalorder %s563_s8, %s557_s20 }
  0x6f   : > { %287 = vst [vmem:[%s828_s11 + $0x7] sm:$0x1] %v286_v23 }
  0x70   : > { %p566_p6 = por %p565_p5, %p564_p0 }
  0x72   : > { %p567_p8 = pnand %p566_p6, %p560_p13 }
  0x74   : > { %570 = shalt.err (!%p567_p8)
}
  0x75   : > { %s571_s12 = scalar_lea.hbm %s843_s18, 128  ;;  %s575_s30 = scalar_lea.hbm %s896_s3, 256 }
  0x76   : > { %p572_p9 = scmp.ne.s32.totalorder %s843_s18, %s571_s12  ;;  %p576_p1 = scmp.lt.u32.totalorder %s843_s18, %s896_s3 }
  0x77   : > { %p577_p3 = scmp.lt.u32.totalorder %s575_s30, %s571_s12  ;;  %p579_p2 = scmp.lt.u32.totalorder %s571_s12, %s843_s18 }
  0x78   : > { %p573_p10 = pnand %p572_p9, %p908_p4 }
  0x79   : > { %p578_p7 = por %p577_p3, %p576_p1 }
  0x7a   : > { %p574_p12 = pneg %p573_p10 }
  0x7b   : > { %p580_p11 = por %p579_p2, %p578_p7 }
  0x7d   : > { %p581_p13 = pnand %p580_p11, %p574_p12 }
  0x7f   : > { %584 = shalt.err (!%p581_p13)
}
  0x80   : > { %420 = dma.vmem_to_hbm [thread:$0]  (%p908_p4), %s845_s15, 128, %s843_s18, %s289_s19  }
  0x81 PF: > { %p437_p0 = scmp.ge.s32.totalorder %s645_s27, 2  ;;  %s315_s28 = sand.u32 1, %s625_s22  }
  0x82   : > { %p909_p5 = scmp.ne.s32.totalorder %s902_s6, 0  ;;  %s316_s9 = scalar_lea.sflag [#allocation6], %s315_s28 }
  0x84   : > { %p430_p6 = pnand %p437_p0, %p909_p5 }
  0x86   : > { %620 = dma.done.wait (!%p430_p6), %s316_s9, 128  }
  0x87   : > { %622 = vsyncadd (!%p430_p6), %s316_s9, 4294967168  ;;  %s22_s27 = sadd.s32 1, %s645_s27   ;;  %s910_s22 = smov %s629_s23 }
  0x88   : > { %p19_p8 = scmp.ge.s32.totalorder %s22_s27, 4   ;;  %s911_s23 = smov %s633_s24 }
  0x89   : > { %s912_s24 = smov %s738_s7  ;;  %s913_s25 = smov %s641_s26 }
  0x8a   : > { %s914_s26 = smov %s916_s29  ;;  %21 = sbr.rel (!%p19_p8) target bundleno = 18 (0x12), region = 78 }
  0x91   :  { %321 = vsyncpa [#allocation5], 1 }
  0x92   :  { %323 = vsyncpa [#allocation5 + $0x1], 1 }
  0x93   :  { %324 = vsyncpa [#allocation8], 1 }
  0x94   :  { %325 = vsyncpa [#allocation6], 1 }
  0x95   :  { %327 = vsyncpa [#allocation6 + $0x1], 1 }

</bundles_post_ra>
